<compile_context>
chip_gen: v7x
topology: tpu7x:2x2x1
jax: 0.10.0
libtpu: 0.0.40
codegen_flags: <defaults>
</compile_context>

<pallas_src>
import functools

import jax
import jax.numpy as jnp
from jax.experimental import pallas as pl
from jax.experimental.pallas import tpu as pltpu

LANE = 128
MAX_TILE_ROWS = 2048       # (2048, 128) f32 tile = 1 MiB per input per buffer.
MIN_ROWS_TO_SPLIT = 1024   # above this, force >= 2 grid blocks (v7x dual-TC).
SMALL_N_ROWS = 64          # below this, launch overhead dominates -> plain jnp.


def _sublane_multiple(dtype):
    itemsize = jnp.dtype(dtype).itemsize
    if itemsize >= 4:
        return 8
    if itemsize == 2:
        return 16
    return 32


def _round_up(x, m):
    return ((x + m - 1) // m) * m


def _masked_pair_norm(pred_ref, gt_ref, *, coord_dim, n_flat, tile_rows):
    """Per-joint L2 norm, placed on each joint's first-coordinate lane.

    Block layout is the natural interleaved flat layout reshaped to
    (tile_rows, 128): lane l of global row r holds flat element r*128 + l,
    i.e. coordinate (idx % coord_dim) of joint (idx // coord_dim).
    Returns (tile_rows, 128) f32 with sqrt(sum_c d_c^2) at lanes where
    lane % coord_dim == 0 and the element is in bounds, 0 elsewhere.
    """
    p = pred_ref[...].astype(jnp.float32)
    g = gt_ref[...].astype(jnp.float32)
    d = p - g
    d2 = d * d
    s = d2
    for k in range(1, coord_dim):        # static, tiny (coord_dim == 2)
        # Lane l picks up d2[lane l + k] of the same row (jnp.roll semantics,
        # shift kept non-negative).  XLU rotate + VPU add: hidden under DMA.
        s = s + pltpu.roll(d2, shift=LANE - k, axis=1)
    norm = jnp.sqrt(s)

    rows = jax.lax.broadcasted_iota(jnp.int32, (tile_rows, LANE), 0)
    lanes = jax.lax.broadcasted_iota(jnp.int32, (tile_rows, LANE), 1)
    gidx = (pl.program_id(0) * tile_rows + rows) * LANE + lanes
    valid = jnp.logical_and(lanes % coord_dim == 0, gidx < n_flat)
    # where() (not multiply) so unspecified data in partial boundary blocks
    # (possibly NaN/Inf) is discarded rather than propagated.
    return jnp.where(valid, norm, 0.0)


def _norm_partial_kernel(pred_ref, gt_ref, out_ref, *, coord_dim, n_flat,
                         tile_rows):
    norm = _masked_pair_norm(pred_ref, gt_ref, coord_dim=coord_dim,
                             n_flat=n_flat, tile_rows=tile_rows)
    out_ref[...] = jnp.sum(norm, axis=0, keepdims=True).reshape(1, 1, LANE)


def _norm_partial_weighted_kernel(pred_ref, gt_ref, w_ref, loss_ref, wsum_ref,
                                  *, coord_dim, n_flat, tile_rows):
    norm = _masked_pair_norm(pred_ref, gt_ref, coord_dim=coord_dim,
                             n_flat=n_flat, tile_rows=tile_rows)
    w = w_ref[...].astype(jnp.float32)   # vis at first-coordinate lanes, 0 elsewhere
    loss_ref[...] = jnp.sum(norm * w, axis=0, keepdims=True).reshape(1, 1, LANE)
    # w is already resident in VMEM: summing it here is free VALU filler and
    # removes a second HBM pass over visibility for the denominator.
    wsum_ref[...] = jnp.sum(w, axis=0, keepdims=True).reshape(1, 1, LANE)


def _flat_rows(x, n_rows):
    """(B, J, C) -> (n_rows, 128) natural flat layout; free reshape when aligned."""
    flat = x.reshape(-1)
    pad = n_rows * LANE - flat.shape[0]
    if pad:
        flat = jnp.pad(flat, (0, pad))
    return flat.reshape(n_rows, LANE)


def _joints_mse_loss_jnp(pose2d_pred, pose2d_gt, visibility=None):
    """Pure-jnp reference / small-input fast path (identical semantics)."""
    diff = pose2d_pred.astype(jnp.float32) - pose2d_gt.astype(jnp.float32)
    norm = jnp.sqrt(jnp.sum(diff * diff, axis=2))
    if visibility is not None:
        vis = visibility.astype(jnp.float32)
        return jnp.sum(norm * vis) / jnp.maximum(jnp.float32(1.0), jnp.sum(vis))
    return jnp.sum(norm) / jnp.float32(pose2d_pred.shape[1])


def joints_mse_loss(pose2d_pred, pose2d_gt, visibility=None):
    """Pallas TPU implementation of JointsMSELoss.forward.

    pose2d_pred, pose2d_gt: (B, J, C) float arrays (C = 2 for 2-D poses).
    visibility:             optional (B, J) float array.
    Returns a scalar float32 loss.
    """
    assert pose2d_pred.shape == pose2d_gt.shape and pose2d_pred.ndim == 3
    b, j, c = pose2d_pred.shape
    n_flat = b * j * c
    n_rows = pl.cdiv(n_flat, LANE)

    # Fast path: at real pose sizes (B x 21 x 2) the pallas_call launch and
    # grid prologue dominate the <1us of work; also used when the coordinate
    # dim does not divide the lane width.
    if n_rows < SMALL_N_ROWS or LANE % c != 0:
        return _joints_mse_loss_jnp(pose2d_pred, pose2d_gt, visibility)

    sublane = max(_sublane_multiple(pose2d_pred.dtype),
                  _sublane_multiple(pose2d_gt.dtype))

    num_blocks = pl.cdiv(n_rows, MAX_TILE_ROWS)
    if n_rows >= MIN_ROWS_TO_SPLIT:
        num_blocks = max(num_blocks, 2)      # let both v7x TensorCores stream
    tile_rows = _round_up(pl.cdiv(n_rows, num_blocks), sublane)
    num_blocks = pl.cdiv(n_rows, tile_rows)

    pred_l = _flat_rows(pose2d_pred, n_rows)
    gt_l = _flat_rows(pose2d_gt, n_rows)

    pose_spec = pl.BlockSpec((tile_rows, LANE), lambda i: (i, 0))
    out_spec = pl.BlockSpec((1, 1, LANE), lambda i: (i, 0, 0))
    out_struct = jax.ShapeDtypeStruct((num_blocks, 1, LANE), jnp.float32)
    compiler_params = pltpu.CompilerParams(
        dimension_semantics=("parallel",),
        vmem_limit_bytes=32 * 1024 * 1024,
    )

    if visibility is None:
        kernel = functools.partial(_norm_partial_kernel, coord_dim=c,
                                   n_flat=n_flat, tile_rows=tile_rows)
        partials = pl.pallas_call(
            kernel,
            out_shape=out_struct,
            grid=(num_blocks,),
            in_specs=[pose_spec, pose_spec],
            out_specs=out_spec,
            compiler_params=compiler_params,
        )(pred_l, gt_l)
        # Divide by num_joints (shape[1]) exactly as the PyTorch module does.
        return jnp.sum(partials) / jnp.float32(j)

    # Weighted path: scatter visibility onto each joint's first-coordinate lane
    # (zeros elsewhere and in padding) so it both weights and masks the norm.
    vis_f = visibility.reshape(b * j).astype(jnp.float32)
    w_cols = jnp.pad(vis_f[:, None], ((0, 0), (0, c - 1)))
    w_flat = jnp.pad(w_cols.reshape(n_flat),
                     (0, num_blocks * tile_rows * LANE - n_flat))
    w_slab = w_flat.reshape(num_blocks * tile_rows, LANE)
    w_spec = pl.BlockSpec((tile_rows, LANE), lambda i: (i, 0))

    kernel = functools.partial(_norm_partial_weighted_kernel, coord_dim=c,
                               n_flat=n_flat, tile_rows=tile_rows)
    loss_p, wsum_p = pl.pallas_call(
        kernel,
        out_shape=(out_struct, out_struct),
        grid=(num_blocks,),
        in_specs=[pose_spec, pose_spec, w_spec],
        out_specs=(out_spec, out_spec),
        compiler_params=compiler_params,
    )(pred_l, gt_l, w_slab)
    denom = jnp.maximum(jnp.float32(1.0), jnp.sum(wsum_p))
    return jnp.sum(loss_p) / denom


if __name__ == "__main__":
    key = jax.random.PRNGKey(0)
    k1, k2, k3, k4, k5, k6 = jax.random.split(key, 6)
    c_dim, n_joints = 2, 21

    # 1) The literal module shape (B x 21 x 2): small-input fast path.
    p_s = jax.random.normal(k1, (2, n_joints, c_dim), jnp.float32) * 10.0
    g_s = jax.random.normal(k2, (2, n_joints, c_dim), jnp.float32) * 10.0
    loss_s = jax.block_until_ready(joints_mse_loss(p_s, g_s))
    ref_s = _joints_mse_loss_jnp(p_s, g_s)
    assert jnp.allclose(loss_s, ref_s, rtol=1e-4, atol=1e-4), (loss_s, ref_s)

    # 2) Larger batch -> exercises the Pallas kernel with a ragged flat length
    #    (tail pad) and a partial boundary block (in-kernel masking).
    p_b = jax.random.normal(k3, (400, n_joints, c_dim), jnp.float32) * 10.0
    g_b = jax.random.normal(k4, (400, n_joints, c_dim), jnp.float32) * 10.0
    loss_b = jax.block_until_ready(joints_mse_loss(p_b, g_b))
    ref_b = _joints_mse_loss_jnp(p_b, g_b)
    assert jnp.allclose(loss_b, ref_b, rtol=1e-4, atol=1e-4), (loss_b, ref_b)

    # 3) Visibility path through the kernel (two outputs, in-kernel denominator).
    vis = (jax.random.uniform(k5, (400, n_joints)) > 0.3).astype(jnp.float32)
    loss_v = jax.block_until_ready(joints_mse_loss(p_b, g_b, visibility=vis))
    ref_v = _joints_mse_loss_jnp(p_b, g_b, visibility=vis)
    assert jnp.allclose(loss_v, ref_v, rtol=1e-4, atol=1e-4), (loss_v, ref_v)

    # 4) Lane-aligned case (B*J*C % 128 == 0): zero-copy reshape, no padding.
    p_a = jax.random.normal(k6, (512, n_joints, c_dim), jnp.float32) * 10.0
    g_a = p_a + 1.0
    loss_a = jax.block_until_ready(joints_mse_loss(p_a, g_a))
    ref_a = _joints_mse_loss_jnp(p_a, g_a)
    assert jnp.allclose(loss_a, ref_a, rtol=1e-4, atol=1e-4), (loss_a, ref_a)

    print("KERNEL_OK")
</pallas_src>

<mosaic_0001>
module attributes {stable_mosaic.version = 11 : i64} {
  func.func @_norm_partial_kernel(%arg0: i32, %arg1: memref<136x128xf32, #tpu.memory_space<vmem>>, %arg2: memref<136x128xf32, #tpu.memory_space<vmem>>, %arg3: memref<1x1x128xf32, #tpu.memory_space<vmem>>) attributes {dimension_semantics = [#tpu.dimension_semantics<parallel>], iteration_bounds = array<i64: 1>, scalar_prefetch = 0 : i64, scratch_operands = 0 : i64, tpu.core_type = #tpu.core_type<tc>, window_params = [{transform_indices = @transform_0, window_bounds = array<i64: 136, 128>}, {transform_indices = @transform_1, window_bounds = array<i64: 136, 128>}, {transform_indices = @transform_2, window_bounds = array<i64: 1, 1, 128>}]} {
    %c0 = arith.constant 0 : index
    %c0_0 = arith.constant 0 : index
    %0 = vector.load %arg1[%c0, %c0_0] : memref<136x128xf32, #tpu.memory_space<vmem>>, vector<136x128xf32>
    %c0_1 = arith.constant 0 : index
    %c0_2 = arith.constant 0 : index
    %1 = vector.load %arg2[%c0_1, %c0_2] : memref<136x128xf32, #tpu.memory_space<vmem>>, vector<136x128xf32>
    %2 = arith.subf %0, %1 : vector<136x128xf32>
    %3 = arith.mulf %2, %2 : vector<136x128xf32>
    %c127_i32 = arith.constant 127 : i32
    %4 = tpu.dynamic_rotate %3 by %c127_i32 dim 1 : vector<136x128xf32>, i32 -> vector<136x128xf32>
    %5 = arith.addf %3, %4 : vector<136x128xf32>
    %6 = math.sqrt %5 : vector<136x128xf32>
    %7 = tpu.iota {dimensions = array<i32: 0>} : vector<136x128xi32>
    %8 = tpu.iota {dimensions = array<i32: 1>} : vector<136x128xi32>
    %c136_i32 = arith.constant 136 : i32
    %9 = arith.muli %arg0, %c136_i32 : i32
    %10 = vector.broadcast %9 : i32 to vector<136x128xi32>
    %11 = arith.addi %10, %7 : vector<136x128xi32>
    %c128_i32 = arith.constant 128 : i32
    %12 = vector.broadcast %c128_i32 : i32 to vector<136x128xi32>
    %13 = arith.muli %11, %12 : vector<136x128xi32>
    %14 = arith.addi %13, %8 : vector<136x128xi32>
    %c2_i32 = arith.constant 2 : i32
    %c0_i32 = arith.constant 0 : i32
    %15 = arith.cmpi eq, %c2_i32, %c0_i32 : i32
    %c1_i32 = arith.constant 1 : i32
    %16 = arith.select %15, %c1_i32, %c2_i32 : i32
    %17 = vector.broadcast %16 : i32 to vector<136x128xi32>
    %18 = arith.remsi %8, %17 : vector<136x128xi32>
    %c0_i32_3 = arith.constant 0 : i32
    %19 = vector.broadcast %c0_i32_3 : i32 to vector<136x128xi32>
    %20 = arith.cmpi ne, %18, %19 : vector<136x128xi32>
    %c0_i32_4 = arith.constant 0 : i32
    %21 = vector.broadcast %c0_i32_4 : i32 to vector<136x128xi32>
    %22 = arith.cmpi slt, %18, %21 : vector<136x128xi32>
    %c0_i32_5 = arith.constant 0 : i32
    %23 = arith.cmpi slt, %16, %c0_i32_5 : i32
    %24 = vector.broadcast %23 : i1 to vector<136x128xi1>
    %25 = vector.broadcast %24 : vector<136x128xi1> to vector<136x128xi1>
    %26 = arith.xori %22, %25 : vector<136x128xi1>
    %27 = arith.andi %26, %20 : vector<136x128xi1>
    %28 = vector.broadcast %16 : i32 to vector<136x128xi32>
    %29 = arith.addi %18, %28 : vector<136x128xi32>
    %30 = arith.select %27, %29, %18 : vector<136x128xi1>, vector<136x128xi32>
    %c0_i32_6 = arith.constant 0 : i32
    %31 = vector.broadcast %c0_i32_6 : i32 to vector<136x128xi32>
    %32 = arith.cmpi eq, %30, %31 : vector<136x128xi32>
    %c16800_i32 = arith.constant 16800 : i32
    %33 = vector.broadcast %c16800_i32 : i32 to vector<136x128xi32>
    %34 = arith.cmpi slt, %14, %33 : vector<136x128xi32>
    %35 = arith.andi %32, %34 : vector<136x128xi1>
    %cst = arith.constant 0.000000e+00 : f32
    %36 = vector.broadcast %cst : f32 to vector<136x128xf32>
    %37 = arith.select %35, %6, %36 : vector<136x128xi1>, vector<136x128xf32>
    %cst_7 = arith.constant dense<0.000000e+00> : vector<128xf32>
    %38 = vector.multi_reduction <add>, %37, %cst_7 [0] : vector<136x128xf32> to vector<128xf32>
    %39 = vector.shape_cast %38 : vector<128xf32> to vector<1x128xf32>
    %40 = vector.shape_cast %39 : vector<1x128xf32> to vector<1x1x128xf32>
    %c0_8 = arith.constant 0 : index
    %c0_9 = arith.constant 0 : index
    %c0_10 = arith.constant 0 : index
    %41 = vector.load %arg3[%c0_8, %c0_9, %c0_10] : memref<1x1x128xf32, #tpu.memory_space<vmem>>, vector<1x1x128xf32>
    tpu.vector_store %arg3[%c0_8, %c0_9, %c0_10], %40 {strides = array<i32>} : memref<1x1x128xf32, #tpu.memory_space<vmem>>, vector<1x1x128xf32>,
    return
  }
  func.func @transform_0(%arg0: i32) -> (i32, i32) {
    %c0_i32 = arith.constant 0 : i32
    %c0_i32_0 = arith.constant 0 : i32
    return %arg0, %c0_i32 : i32, i32
  }
  func.func @transform_1(%arg0: i32) -> (i32, i32) {
    %c0_i32 = arith.constant 0 : i32
    %c0_i32_0 = arith.constant 0 : i32
    return %arg0, %c0_i32 : i32, i32
  }
  func.func @transform_2(%arg0: i32) -> (i32, i32, i32) {
    %c0_i32 = arith.constant 0 : i32
    %c0_i32_0 = arith.constant 0 : i32
    %c0_i32_1 = arith.constant 0 : i32
    return %arg0, %c0_i32, %c0_i32_0 : i32, i32, i32
  }
}

</mosaic_0001>

<bundles_post_ra>
// kernel: tpu_custom_call.1
= control target key start
LH: loop header
LB: loop body
LE: loop exit
PB: predicated region body
PF: predicated region fallthrough
CT: control target
= control target key end

     0   :  { %7 = vsyncpa [#allocation3], 0  ;;  %s1133_s0 = inlined_call_operand.hbm [shape: f32[132,128], index: 0, kind: input, shape index: {}]   ;;  %s1134_s1 = inlined_call_operand.hbm [shape: f32[132,128], index: 1, kind: input, shape index: {}]   ;;  %s1135_s2 = inlined_call_operand.hbm [shape: f32[1,1,128], index: 2, kind: output, shape index: {}]  }
   0x1   :  { %8 = vsyncpa [#allocation6], 0 }
   0x2   :  { %9 = vsyncpa [#allocation4], 0  ;;  %s566_s9 = smov [#allocation2]   ;;  %s494_s13 = scalar_lea.hbm %s1133_s0, 2176 }
   0x3   :  { %s15_s10 = sshll.u32 %s566_s9, 4  ;;  %p495_p0 = scmp.ne.s32.totalorder %s1133_s0, %s494_s13  ;;  %s16_s10 = int_to_ptr.vmem [resolvable:$true] %s15_s10 }
   0x4   :  { %p498_p1 = scmp.lt.u32.totalorder %s494_s13, %s1133_s0 }
   0x6   :  { %p500_p2 = pnand %p498_p1, %p495_p0 }
   0x8   :  { %503 = shalt.err (!%p500_p2)
}
   0x9   :  { %s504_s18 = scalar_lea.vmem %s16_s10, 2176  ;;  %p509_p4 = scmp.lt.s32.totalorder %s16_s10, %s16_s10 }
   0xa   :  { %p505_p3 = scmp.ne.s32.totalorder %s16_s10, %s504_s18  ;;  %p510_p5 = scmp.lt.s32.totalorder %s504_s18, %s504_s18 }
   0xc   :  { %p511_p6 = por %p510_p5, %p509_p4 }
   0xe   :  { %p512_p7 = pnand %p511_p6, %p505_p3 }
  0x10   :  { %515 = shalt.err (!%p512_p7)
}
  0x11   :  { %s567_s19 = smov 128   ;;  %s568_s20 = smov 8  }
  0x12   :  { %21 = dma.hbm_to_vmem [thread:$0]  %s1133_s0, 2176, %s16_s10, [#allocation3], %s567_s19, %s567_s19, %s568_s20  }
  0x13   :  { %s569_s23 = smov [#allocation5]   ;;  %s516_s27 = scalar_lea.hbm %s1134_s1, 2176 }
  0x14   :  { %s27_s24 = sshll.u32 %s569_s23, 4  ;;  %p517_p8 = scmp.ne.s32.totalorder %s1134_s1, %s516_s27  ;;  %s28_s24 = int_to_ptr.vmem [resolvable:$true] %s27_s24 }
  0x15   :  { %p520_p9 = scmp.lt.u32.totalorder %s516_s27, %s1134_s1 }
  0x17   :  { %p522_p10 = pnand %p520_p9, %p517_p8 }
  0x19   :  { %525 = shalt.err (!%p522_p10)
}
  0x1a   :  { %s526_s4 = scalar_lea.vmem %s28_s24, 2176  ;;  %p531_p12 = scmp.lt.s32.totalorder %s28_s24, %s28_s24 }
  0x1b   :  { %p527_p11 = scmp.ne.s32.totalorder %s28_s24, %s526_s4  ;;  %p532_p13 = scmp.lt.s32.totalorder %s526_s4, %s526_s4 }
  0x1d   :  { %p533_p0 = por %p532_p13, %p531_p12 }
  0x1f   :  { %p534_p1 = pnand %p533_p0, %p527_p11 }
  0x21   :  { %537 = shalt.err (!%p534_p1)
}
  0x22   :  { %33 = dma.hbm_to_vmem [thread:$0]  %s1134_s1, 2176, %s28_s24, [#allocation6], %s567_s19, %s567_s19, %s568_s20  }
  0x23   :  { %560 = dma.done.wait [#allocation3], 2176  }
  0x24   :  { %561 = vsyncadd [#allocation3], 4294965120 }
  0x25   :  { %562 = dma.done.wait [#allocation6], 2176  }
  0x26   :  { %563 = vsyncadd [#allocation6], 4294965120  ;;  %v42_v0 = vld [vmem:[#allocation2 + $0x10] sm:$0xff]  ;;  %v59_v1 = vld [vmem:[#allocation5 + $0x10] sm:$0xff]  ;;  %s570_s1 = smov 127   ;;  %s571_s6 = smov [#allocation7]  }
  0x27   :  { %v40_v2 = vld [vmem:[#allocation2] sm:$0xff]  ;;  %v76_v3 = vsub.f32 %v42_v0, %v59_v1  ;;  %v57_v4 = vld [vmem:[#allocation5] sm:$0xff]  ;;  %v43_v5 = vld [vmem:[#allocation2 + $0x18] sm:$0xff]  ;;  %s444_s7 = sshll.u32 %s571_s6, 4  ;;  %s445_s7 = int_to_ptr.vmem [resolvable:$true] %s444_s7 }
  0x28   :  { %v60_v6 = vld [vmem:[#allocation5 + $0x18] sm:$0xff]  ;;  %v74_v7 = vsub.f32 %v40_v2, %v57_v4  ;;  %v41_v9 = vld [vmem:[#allocation2 + $0x8] sm:$0xff]  ;;  %v58_v10 = vld [vmem:[#allocation5 + $0x8] sm:$0xff]  ;;  %v278_v4 = vlaneseq  ;;  %s538_s8 = scalar_lea.vmem %s445_s7, 16  ;;  %s542_s9 = scalar_lea.vmem %s445_s7, 32 }
  0x29   :  { %v77_v8 = vsub.f32 %v43_v5, %v60_v6  ;;  %v45_v11 = vld [vmem:[#allocation2 + $0x28] sm:$0xff]  ;;  %v611_v12 = vmul.f32 %v76_v3, %v76_v3  ;;  %v75_v13 = vsub.f32 %v41_v9, %v58_v10  ;;  %v62_v14 = vld [vmem:[#allocation5 + $0x28] sm:$0xff]  ;;  %v44_v15 = vld [vmem:[#allocation2 + $0x20] sm:$0xff]  ;;  %p539_p2 = scmp.ne.s32.totalorder %s445_s7, %s538_s8  ;;  %p543_p3 = scmp.lt.s32.totalorder %s445_s7, %s445_s7 }
  0x2a   :  { %v61_v16 = vld [vmem:[#allocation5 + $0x20] sm:$0xff]  ;;  %v613_v17 = vmul.f32 %v74_v7, %v74_v7  ;;  %v79_v19 = vsub.f32 %v45_v11, %v62_v14  ;;  %v47_v22 = vld [vmem:[#allocation2 + $0x38] sm:$0xff]  ;;  %v64_v23 = vld [vmem:[#allocation5 + $0x38] sm:$0xff]  ;;  %v679_v5 = vshrl.u32 %v278_v4, 7  ;;  %v682_v7 = vand.u32 127, %v278_v4  ;;  %p544_p4 = scmp.lt.s32.totalorder %s542_s9, %s538_s8 }
  0x2b   :  { %112 = vrot.lane.b32.xlu1 %v611_v12, %s570_s1  ;;  %v617_v18 = vmul.f32 %v77_v8, %v77_v8  ;;  %v621_v20 = vmul.f32 %v75_v13, %v75_v13  ;;  %v78_v21 = vsub.f32 %v44_v15, %v61_v16  ;;  %v46_v24 = vld [vmem:[#allocation2 + $0x30] sm:$0xff]  ;;  %v63_v25 = vld [vmem:[#allocation5 + $0x30] sm:$0xff]  ;;  %v81_v27 = vsub.f32 %v47_v22, %v64_v23  ;;  %v49_v30 = vld [vmem:[#allocation2 + $0x48] sm:$0xff] }
  0x2c   :  { %108 = vrot.lane.b32.xlu0 %v613_v17, %s570_s1  ;;  %v625_v26 = vmul.f32 %v79_v19, %v79_v19  ;;  %v80_v29 = vsub.f32 %v46_v24, %v63_v25  ;;  %v66_v31 = vld [vmem:[#allocation5 + $0x48] sm:$0xff]  ;;  %v48_v32 = vld [vmem:[#allocation2 + $0x40] sm:$0xff]  ;;  %v65_v33 = vld [vmem:[#allocation5 + $0x40] sm:$0xff]  ;;  %v281_v6 = vadd.s32 16, %v679_v5  ;;  %v282_v8 = vadd.s32 24, %v679_v5  ;;  %p545_p5 = por %p544_p4, %p543_p3 }
  0x2d   :  { %v629_v28 = vmul.f32 %v78_v21, %v78_v21  ;;  %v633_v34 = vmul.f32 %v81_v27, %v81_v27  ;;  %v83_v35 = vsub.f32 %v49_v30, %v66_v31  ;;  %v82_v37 = vsub.f32 %v48_v32, %v65_v33  ;;  %v51_v38 = vld [vmem:[#allocation2 + $0x58] sm:$0xff]  ;;  %v68_v39 = vld [vmem:[#allocation5 + $0x58] sm:$0xff]  ;;  %v50_v40 = vld [vmem:[#allocation2 + $0x50] sm:$0xff] }
  0x2e   :  { %v637_v36 = vmul.f32 %v80_v29, %v80_v29  ;;  %v67_v41 = vld [vmem:[#allocation5 + $0x50] sm:$0xff]  ;;  %v85_v43 = vsub.f32 %v51_v38, %v68_v39  ;;  %v53_v46 = vld [vmem:[#allocation2 + $0x68] sm:$0xff]  ;;  %v70_v47 = vld [vmem:[#allocation5 + $0x68] sm:$0xff]  ;;  %v280_v9 = vadd.s32 8, %v679_v5  ;;  %v284_v10 = vadd.s32 40, %v679_v5  ;;  %p546_p6 = pnand %p545_p5, %p539_p2 }
  0x2f   :  { %114 = vrot.lane.b32.xlu1 %v617_v18, %s570_s1  ;;  %v641_v42 = vmul.f32 %v83_v35, %v83_v35  ;;  %v645_v44 = vmul.f32 %v82_v37, %v82_v37  ;;  %v84_v45 = vsub.f32 %v50_v40, %v67_v41  ;;  %v52_v48 = vld [vmem:[#allocation2 + $0x60] sm:$0xff]  ;;  %v69_v49 = vld [vmem:[#allocation5 + $0x60] sm:$0xff]  ;;  %v87_v51 = vsub.f32 %v53_v46, %v70_v47  ;;  %v55_v54 = vld [vmem:[#allocation2 + $0x78] sm:$0xff] }
  0x30   :  { %110 = vrot.lane.b32.xlu0 %v621_v20, %s570_s1  ;;  %v649_v50 = vmul.f32 %v85_v43, %v85_v43  ;;  %v86_v53 = vsub.f32 %v52_v48, %v69_v49  ;;  %v72_v55 = vld [vmem:[#allocation5 + $0x78] sm:$0xff]  ;;  %v54_v56 = vld [vmem:[#allocation2 + $0x70] sm:$0xff]  ;;  %v71_v57 = vld [vmem:[#allocation5 + $0x70] sm:$0xff]  ;;  %v319_v11 = vmul.u32 128, %v281_v6  ;;  %v355_v13 = vand.u32 1, %v682_v7 }
  0x31   :  { %v653_v52 = vmul.f32 %v84_v45, %v84_v45  ;;  %v657_v58 = vmul.f32 %v87_v51, %v87_v51  ;;  %v89_v59 = vsub.f32 %v55_v54, %v72_v55  ;;  %v88_v61 = vsub.f32 %v54_v56, %v71_v57  ;;  %v56_v62 = vld [vmem:[#allocation2 + $0x80] sm:$0xff]  ;;  %v73_v63 = vld [vmem:[#allocation5 + $0x80] sm:$0xff] }
  0x32   :  { %v661_v60 = vmul.f32 %v86_v53, %v86_v53  ;;  %v90_v2 = vsub.f32 %v56_v62, %v73_v63  ;;  %v317_v15 = vmul.u32 128, %v679_v5  ;;  %v320_v16 = vmul.u32 128, %v282_v8 }
  0x33   :  { %118 = vrot.lane.b32.xlu1 %v625_v26, %s570_s1  ;;  %v665_v0 = vmul.f32 %v89_v59, %v89_v59  ;;  %v669_v1 = vmul.f32 %v88_v61, %v88_v61  ;;  %v318_v22 = vmul.u32 128, %v280_v9  ;;  %v283_v23 = vadd.s32 32, %v679_v5 }
  0x34   :  { %116 = vrot.lane.b32.xlu0 %v629_v28, %s570_s1  ;;  %v675_v3 = vmul.f32 %v90_v2, %v90_v2  ;;  %v286_v24 = vadd.s32 56, %v679_v5  ;;  %v322_v27 = vmul.u32 128, %v284_v10  ;;  %v285_v29 = vadd.s32 48, %v679_v5 }
  0x35   :  { %v288_v30 = vadd.s32 72, %v679_v5  ;;  %v700_v31 = vadd.s32 %v319_v11, %v682_v7  ;;  %v289_v32 = vadd.s32 80, %v679_v5  ;;  %v706_v33 = vadd.s32 %v317_v15, %v682_v7 }
  0x36   :  { %v290_v37 = vadd.s32 88, %v679_v5  ;;  %v717_v39 = vadd.s32 %v318_v22, %v682_v7  ;;  %v321_v41 = vmul.u32 128, %v283_v23  ;;  %v324_v43 = vmul.u32 128, %v286_v24 }
  0x37   :  { %122 = vrot.lane.b32.xlu1 %v633_v34, %s570_s1  ;;  %v723_v46 = vadd.s32 %v322_v27, %v682_v7  ;;  %v323_v47 = vmul.u32 128, %v285_v29  ;;  %v326_v48 = vmul.u32 128, %v288_v30  ;;  %vm729_vm0 = vcmp.eq.s32.totalorder %v355_v13, 0 }
  0x38   :  { %120 = vrot.lane.b32.xlu0 %v637_v36, %s570_s1  ;;  %v327_v51 = vmul.u32 128, %v289_v32  ;;  %vm364_vm1 = vcmp.lt.s32.totalorder %v706_v33, 16800  ;;  %v736_v54 = vadd.s32 104, %v679_v5  ;;  %v739_v55 = vadd.s32 112, %v679_v5 }
  0x39   :  { %v328_v56 = vmul.u32 128, %v290_v37  ;;  %vm365_vm2 = vcmp.lt.s32.totalorder %v717_v39, 16800  ;;  %v746_v59 = vadd.s32 %v321_v41, %v682_v7  ;;  %v749_v62 = vadd.s32 120, %v679_v5 }
  0x3a   :  { %v755_v2 = vadd.s32 %v324_v43, %v682_v7  ;;  %v758_v4 = vadd.s32 %v323_v47, %v682_v7  ;;  %v761_v6 = vadd.s32 %v326_v48, %v682_v7  ;;  %vm366_vm3 = vcmp.lt.s32.totalorder %v700_v31, 16800 }
  0x3b   :  { %126 = vrot.lane.b32.xlu1 %v641_v42, %s570_s1  ;;  %v769_v8 = vadd.s32 %v327_v51, %v682_v7  ;;  %v330_v10 = vmul.u32 128, %v736_v54  ;;  %v331_v11 = vmul.u32 128, %v739_v55  ;;  %v776_v13 = vadd.s32 %v328_v56, %v682_v7  ;;  %vm856_vm9 = vmand %vm729_vm0, %vm366_vm3 }
  0x3c   :  { %124 = vrot.lane.b32.xlu0 %v645_v44, %s570_s1  ;;  %v332_v22 = vmul.u32 128, %v749_v62 }
  0x3f   :  { %130 = vrot.lane.b32.xlu1 %v649_v50, %s570_s1 }
  0x40   :  { %128 = vrot.lane.b32.xlu0 %v653_v52, %s570_s1 }
  0x43   :  { %134 = vrot.lane.b32.xlu1 %v657_v58, %s570_s1 }
  0x44   :  { %132 = vrot.lane.b32.xlu0 %v661_v60, %s570_s1 }
  0x47   :  { %138 = vrot.lane.b32.xlu1 %v665_v0, %s570_s1 }
  0x48   :  { %136 = vrot.lane.b32.xlu0 %v669_v1, %s570_s1 }
  0x4c   :  { %140 = vrot.lane.b32.xlu0 %v675_v3, %s570_s1 }
  0x9d   :  { %v113_v14 = vpop.permute.xlu1 %112 }
  0x9e   :  { %v690_v19 = vadd.f32 %v113_v14, %v611_v12  ;;  %v109_v21 = vpop.permute.xlu0 %108  ;;  %v287_v12 = vadd.s32 64, %v679_v5 }
  0x9f   :  { %v695_v25 = vadd.f32 %v109_v21, %v613_v17  ;;  %v710_v17 = vadd.s32 %v320_v16, %v682_v7  ;;  %v784_v21 = vadd.s32 128, %v679_v5 }
  0xa0   :  { %460 = vrsqrt.f32 %v690_v19  ;;  %v325_v49 = vmul.u32 128, %v287_v12  ;;  %vm175_vm4 = vcmp.eq.f32.partialorder %v690_v19, inf  ;;  %vm177_vm6 = vcmp.eq.f32.partialorder %v690_v19, 0.0 }
  0xa1   :  { %462 = vrsqrt.f32 %v695_v25  ;;  %v115_v35 = vpop.permute.xlu1 %114  ;;  %vm367_vm5 = vcmp.lt.s32.totalorder %v710_v17, 16800  ;;  %v178_v24 = vand.u32 2147483648, %v690_v19  ;;  %vm161_vm7 = vcmp.eq.f32.partialorder %v695_v25, inf }
  0xa2   :  { %v714_v38 = vadd.f32 %v115_v35, %v617_v18  ;;  %v111_v40 = vpop.permute.xlu0 %110  ;;  %v727_v18 = vadd.s32 96, %v679_v5  ;;  %vm163_vm8 = vcmp.eq.f32.partialorder %v695_v25, 0.0  ;;  %v164_v5 = vand.u32 2147483648, %v695_v25 }
  0xa3   :  { %v720_v45 = vadd.f32 %v111_v40, %v621_v20 }
  0xa4   :  { %464 = vrsqrt.f32 %v714_v38  ;;  %vm182_vm10 = vcmp.eq.f32.partialorder %v714_v38, inf  ;;  %vm184_vm11 = vcmp.eq.f32.partialorder %v714_v38, 0.0  ;;  %v185_v32 = vand.u32 2147483648, %v714_v38 }
  0xa5   :  { %466 = vrsqrt.f32 %v720_v45  ;;  %v119_v20 = vpop.permute.xlu1 %118  ;;  %vm168_vm12 = vcmp.eq.f32.partialorder %v720_v45, inf  ;;  %vm170_vm13 = vcmp.eq.f32.partialorder %v720_v45, 0.0  ;;  %v171_v41 = vand.u32 2147483648, %v720_v45 }
  0xa6   :  { %v743_v57 = vadd.f32 %v119_v20, %v625_v26  ;;  %v117_v61 = vpop.permute.xlu0 %116  ;;  %v766_v26 = vadd.s32 %v325_v49, %v682_v7 }
  0xa7   :  { %v752_v63 = vadd.f32 %v117_v61, %v629_v28  ;;  %v329_v28 = vmul.u32 128, %v727_v18 }
  0xa8   :  { %468 = vrsqrt.f32 %v743_v57  ;;  %vm196_vm15 = vcmp.eq.f32.partialorder %v743_v57, inf  ;;  %vm198_vm14 = vcmp.eq.f32.partialorder %v743_v57, 0.0  ;;  %v199_v20 = vand.u32 2147483648, %v743_v57 }
  0xa9   :  { %470 = vrsqrt.f32 %v752_v63  ;;  %v123_v9 = vpop.permute.xlu1 %122 }
  0xaa   :  { %v461_v14 = vpop.eup %460  ;;  %v781_v15 = vadd.f32 %v123_v9, %v633_v34  ;;  %v121_v16 = vpop.permute.xlu0 %120 }
  0xab   :  { %v463_v23 = vpop.eup %462  ;;  %v791_v27 = vadd.f32 %v121_v16, %v637_v36  ;;  %v174_v29 = vmul.f32 %v461_v14, %v690_v19 }
  0xac   :  { %v160_v34 = vmul.f32 %v463_v23, %v695_v25  ;;  %472 = vrsqrt.f32 %v781_v15  ;;  %vm210_vm3 = vcmp.eq.f32.partialorder %v781_v15, inf }
  0xad   :  { %474 = vrsqrt.f32 %v791_v27  ;;  %v127_v36 = vpop.permute.xlu1 %126  ;;  %v176_v47 = vsel %vm175_vm4, %v690_v19, %v174_v29  ;;  %vm189_vm4 = vcmp.eq.f32.partialorder %v752_v63, inf }
  0xae   :  { %v465_v30 = vpop.eup %464  ;;  %v162_v12 = vsel %vm161_vm7, %v695_v25, %v160_v34  ;;  %v125_v35 = vpop.permute.xlu0 %124  ;;  %v811_v43 = vadd.f32 %v127_v36, %v641_v42  ;;  %vm820_vm7 = vmand %vm729_vm0, %vm364_vm1  ;;  %v179_v16 = vsel %vm177_vm6, %v178_v24, %v176_v47  ;;  %v192_v34 = vand.u32 2147483648, %v752_v63 }
  0xaf   :  { %v467_v37 = vpop.eup %466  ;;  %v181_v40 = vmul.f32 %v465_v30, %v714_v38  ;;  %v828_v42 = vadd.f32 %v125_v35, %v645_v44  ;;  %v165_v51 = vsel %vm163_vm8, %v164_v5, %v162_v12  ;;  %vm836_vm1 = vmand %vm729_vm0, %vm365_vm2  ;;  %vm191_vm2 = vcmp.eq.f32.partialorder %v752_v63, 0.0 }
  0xb0   :  { %v167_v49 = vmul.f32 %v467_v37, %v720_v45  ;;  %476 = vrsqrt.f32 %v811_v43  ;;  %vm371_vm8 = vcmp.lt.s32.totalorder %v755_v2, 16800  ;;  %v398_v5 = vsel %vm820_vm7, %v165_v51, 0.0  ;;  %vm877_vm6 = vmand %vm729_vm0, %vm367_vm5 }
  0xb1   :  { %v131_v56 = vpop.permute.xlu1 %130  ;;  %v183_v25 = vsel %vm182_vm10, %v714_v38, %v181_v40  ;;  %478 = vrsqrt.f32 %v828_v42  ;;  %vm372_vm10 = vcmp.lt.s32.totalorder %v766_v26, 16800  ;;  %v400_v17 = vsel %vm856_vm9, %v179_v16, 0.0 }
  0xb2   :  { %v469_v44 = vpop.eup %468  ;;  %v169_v39 = vsel %vm168_vm12, %v720_v45, %v167_v49  ;;  %v129_v61 = vpop.permute.xlu0 %128  ;;  %v186_v45 = vsel %vm184_vm11, %v185_v32, %v183_v25  ;;  %vm212_vm12 = vcmp.eq.f32.partialorder %v781_v15, 0.0  ;;  %v885_v30 = vadd.f32 %v131_v56, %v649_v50 }
  0xb3   :  { %v471_v9 = vpop.eup %470  ;;  %v172_v23 = vsel %vm170_vm13, %v171_v41, %v169_v39  ;;  %v195_v29 = vmul.f32 %v469_v44, %v743_v57  ;;  %v896_v32 = vadd.f32 %v129_v61, %v653_v52  ;;  %vm1146_vm5 = vcmp.lt.s32.totalorder %v746_v59, 16800 }
  0xb4   :  { %v399_v31 = vsel %vm836_vm1, %v172_v23, 0.0  ;;  %v188_v36 = vmul.f32 %v471_v9, %v752_v63  ;;  %vm902_vm11 = vmand %vm729_vm0, %vm1146_vm5  ;;  %vm203_vm9 = vcmp.eq.f32.partialorder %v791_v27, inf  ;;  %vm373_vm13 = vcmp.lt.s32.totalorder %v761_v6, 16800 }
  0xb5   :  { %v415_v24 = vadd.f32 %v399_v31, %v398_v5  ;;  %v135_v12 = vpop.permute.xlu1 %134  ;;  %v197_v37 = vsel %vm196_vm15, %v743_v57, %v195_v29  ;;  %v401_v52 = vsel %vm877_vm6, %v186_v45, 0.0  ;;  %480 = vrsqrt.f32 %v885_v30  ;;  %vm957_vm5 = vmand %vm729_vm0, %vm371_vm8 }
  0xb6   :  { %v473_v35 = vpop.eup %472  ;;  %v190_v38 = vsel %vm189_vm4, %v752_v63, %v188_v36  ;;  %v133_v40 = vpop.permute.xlu0 %132  ;;  %v916_v51 = vadd.f32 %v135_v12, %v657_v58  ;;  %vm1149_vm15 = vcmp.lt.s32.totalorder %v723_v46, 16800  ;;  %v200_v33 = vsel %vm198_vm14, %v199_v20, %v197_v37  ;;  %vm982_vm8 = vmand %vm729_vm0, %vm372_vm10 }
  0xb7   :  { %v475_v41 = vpop.eup %474  ;;  %v416_v50 = vadd.f32 %v415_v24, %v400_v17  ;;  %v193_v48 = vsel %vm191_vm2, %v192_v34, %v190_v38  ;;  %v209_v49 = vmul.f32 %v473_v35, %v781_v15  ;;  %vm922_vm7 = vmand %vm729_vm0, %vm1149_vm15  ;;  %vm205_vm1 = vcmp.eq.f32.partialorder %v791_v27, 0.0 }
  0xb8   :  { %v202_v59 = vmul.f32 %v475_v41, %v791_v27  ;;  %v206_v44 = vand.u32 2147483648, %v791_v27  ;;  %v402_v58 = vsel %vm902_vm11, %v193_v48, 0.0  ;;  %482 = vrsqrt.f32 %v896_v32 }
  0xb9   :  { %v417_v56 = vadd.f32 %v416_v50, %v401_v52  ;;  %v211_v46 = vsel %vm210_vm3, %v781_v15, %v209_v49  ;;  %v213_v20 = vand.u32 2147483648, %v781_v15  ;;  %vm1152_vm14 = vcmp.lt.s32.totalorder %v758_v4, 16800 }
  0xba   :  { %v204_v25 = vsel %vm203_vm9, %v791_v27, %v202_v59  ;;  %v137_v39 = vpop.permute.xlu0 %136  ;;  %v477_v61 = vpop.eup %476  ;;  %vm942_vm4 = vmand %vm729_vm0, %vm1152_vm14  ;;  %vm224_vm2 = vcmp.eq.f32.partialorder %v811_v43, inf  ;;  %vm374_vm3 = vcmp.lt.s32.totalorder %v769_v8, 16800  ;;  %v403_v23 = vsel %vm922_vm7, %v200_v33, 0.0 }
  0xbb   :  { %v418_v57 = vadd.f32 %v417_v56, %v402_v58  ;;  %v207_v14 = vsel %vm205_vm1, %v206_v44, %v204_v25  ;;  %v139_v27 = vpop.permute.xlu1 %138  ;;  %v479_v16 = vpop.eup %478  ;;  %v223_v29 = vmul.f32 %v477_v61, %v811_v43  ;;  %vm217_vm6 = vcmp.eq.f32.partialorder %v828_v42, inf  ;;  %vm1042_vm15 = vmand %vm729_vm0, %vm374_vm3 }
  0xbc   :  { %484 = vrsqrt.f32 %v916_v51  ;;  %v214_v34 = vsel %vm212_vm12, %v213_v20, %v211_v46  ;;  %v216_v31 = vmul.f32 %v479_v16, %v828_v42  ;;  %vm219_vm11 = vcmp.eq.f32.partialorder %v828_v42, 0.0  ;;  %vm1005_vm12 = vmand %vm729_vm0, %vm373_vm13 }
  0xbd   :  { %v419_v5 = vadd.f32 %v418_v57, %v403_v23  ;;  %vm375_vm9 = vcmp.lt.s32.totalorder %v776_v13, 16800  ;;  %v404_v36 = vsel %vm942_vm4, %v207_v14, 0.0  ;;  %v220_v2 = vand.u32 2147483648, %v828_v42 }
  0xbe   :  { %v970_v19 = vadd.f32 %v133_v40, %v661_v60  ;;  %v973_v45 = vadd.f32 %v139_v27, %v665_v0  ;;  %v225_v24 = vsel %vm224_vm2, %v811_v43, %v223_v29  ;;  %v218_v60 = vsel %vm217_vm6, %v828_v42, %v216_v31  ;;  %v141_v35 = vpop.permute.xlu0 %140  ;;  %vm1056_vm2 = vmand %vm729_vm0, %vm375_vm9 }
  0xbf   :  { %v420_v15 = vadd.f32 %v419_v5, %v404_v36  ;;  %v990_v0 = vadd.f32 %v137_v39, %v669_v1  ;;  %v405_v17 = vsel %vm957_vm5, %v214_v34, 0.0  ;;  %v227_v37 = vand.u32 2147483648, %v811_v43  ;;  %v481_v1 = vpop.eup %480 }
  0xc0   :  { %v221_v26 = vsel %vm219_vm11, %v220_v2, %v218_v60  ;;  %486 = vrsqrt.f32 %v970_v19  ;;  %vm226_vm10 = vcmp.eq.f32.partialorder %v811_v43, 0.0  ;;  %v333_v40 = vmul.u32 128, %v784_v21 }
  0xc1   :  { %v421_v38 = vadd.f32 %v420_v15, %v405_v17  ;;  %v346_v42 = vadd.s32 %v329_v28, %v682_v7  ;;  %v228_v50 = vsel %vm226_vm10, %v227_v37, %v225_v24  ;;  %v406_v43 = vsel %vm982_vm8, %v221_v26, 0.0 }
  0xc2   :  { %488 = vrsqrt.f32 %v973_v45  ;;  %v1013_v21 = vadd.f32 %v141_v35, %v675_v3  ;;  %v237_v28 = vmul.f32 %v481_v1, %v885_v30  ;;  %v347_v6 = vadd.s32 %v330_v10, %v682_v7  ;;  %v483_v47 = vpop.eup %482 }
  0xc3   :  { %v422_v18 = vadd.f32 %v421_v38, %v406_v43  ;;  %490 = vrsqrt.f32 %v990_v0  ;;  %vm238_vm13 = vcmp.eq.f32.partialorder %v885_v30, inf  ;;  %v348_v48 = vadd.s32 %v331_v11, %v682_v7 }
  0xc4   :  { %492 = vrsqrt.f32 %v1013_v21  ;;  %v1028_v3 = vadd.s32 %v332_v22, %v682_v7  ;;  %v407_v49 = vsel %vm1005_vm12, %v228_v50, 0.0  ;;  %v239_v54 = vsel %vm238_vm13, %v885_v30, %v237_v28 }
  0xc5   :  { %v230_v10 = vmul.f32 %v483_v47, %v896_v32  ;;  %v1035_v52 = vadd.s32 %v333_v40, %v682_v7  ;;  %v241_v63 = vand.u32 2147483648, %v885_v30  ;;  %vm231_vm7 = vcmp.eq.f32.partialorder %v896_v32, inf }
  0xc6   :  { %v485_v59 = vpop.eup %484  ;;  %v234_v62 = vand.u32 2147483648, %v896_v32  ;;  %v423_v11 = vadd.f32 %v422_v18, %v407_v49  ;;  %vm240_vm1 = vcmp.eq.f32.partialorder %v885_v30, 0.0  ;;  %vm233_vm14 = vcmp.eq.f32.partialorder %v896_v32, 0.0 }
  0xc7   :  { %v232_v7 = vsel %vm231_vm7, %v896_v32, %v230_v10  ;;  %v251_v22 = vmul.f32 %v485_v59, %v916_v51  ;;  %v242_v8 = vsel %vm240_vm1, %v241_v63, %v239_v54  ;;  %vm376_vm4 = vcmp.lt.s32.totalorder %v346_v42, 16800 }
  0xc8   :  { %v235_v33 = vsel %vm233_vm14, %v234_v62, %v232_v7  ;;  %vm377_vm3 = vcmp.lt.s32.totalorder %v347_v6, 16800  ;;  %vm378_vm6 = vcmp.lt.s32.totalorder %v348_v48, 16800  ;;  %vm379_vm5 = vcmp.lt.s32.totalorder %v1028_v3, 16800  ;;  %vm1077_vm13 = vmand %vm729_vm0, %vm376_vm4 }
  0xc9   :  { %v408_v30 = vsel %vm1042_vm15, %v235_v33, 0.0  ;;  %vm252_vm11 = vcmp.eq.f32.partialorder %v916_v51, inf  ;;  %vm254_vm8 = vcmp.eq.f32.partialorder %v916_v51, 0.0  ;;  %vm380_vm10 = vcmp.lt.s32.totalorder %v1035_v52, 16800  ;;  %vm1092_vm1 = vmand %vm729_vm0, %vm377_vm3 }
  0xca   :  { %v487_v32 = vpop.eup %486  ;;  %v424_v13 = vadd.f32 %v423_v11, %v408_v30  ;;  %v253_v44 = vsel %vm252_vm11, %v916_v51, %v251_v22  ;;  %v255_v58 = vand.u32 2147483648, %v916_v51  ;;  %v409_v25 = vsel %vm1056_vm2, %v242_v8, 0.0  ;;  %vm395_vm2 = vmand %vm729_vm0, %vm378_vm6 }
  0xcb   :  { %v244_v46 = vmul.f32 %v487_v32, %v970_v19  ;;  %vm245_vm9 = vcmp.eq.f32.partialorder %v970_v19, inf  ;;  %vm247_vm12 = vcmp.eq.f32.partialorder %v970_v19, 0.0  ;;  %v248_v61 = vand.u32 2147483648, %v970_v19  ;;  %vm396_vm11 = vmand %vm729_vm0, %vm379_vm5 }
  0xcc   :  { %v489_v39 = vpop.eup %488  ;;  %v425_v20 = vadd.f32 %v424_v13, %v409_v25  ;;  %vm259_vm15 = vcmp.eq.f32.partialorder %v990_v0, inf  ;;  %v262_v16 = vand.u32 2147483648, %v990_v0  ;;  %v256_v34 = vsel %vm254_vm8, %v255_v58, %v253_v44  ;;  %vm397_vm8 = vmand %vm729_vm0, %vm380_vm10 }
  0xcd   :  { %v491_v9 = vpop.eup %490  ;;  %v246_v14 = vsel %vm245_vm9, %v970_v19, %v244_v46  ;;  %v265_v27 = vmul.f32 %v489_v39, %v973_v45  ;;  %vm266_vm7 = vcmp.eq.f32.partialorder %v973_v45, inf  ;;  %vm261_vm14 = vcmp.eq.f32.partialorder %v990_v0, 0.0 }
  0xce   :  { %v493_v23 = vpop.eup %492  ;;  %v258_v29 = vmul.f32 %v491_v9, %v990_v0  ;;  %v249_v4 = vsel %vm247_vm12, %v248_v61, %v246_v14  ;;  %v269_v19 = vand.u32 2147483648, %v973_v45  ;;  %vm273_vm4 = vcmp.eq.f32.partialorder %v1013_v21, inf }
  0xcf   :  { %v267_v31 = vsel %vm266_vm7, %v973_v45, %v265_v27  ;;  %v272_v36 = vmul.f32 %v493_v23, %v1013_v21  ;;  %v410_v2 = vsel %vm1077_vm13, %v249_v4, 0.0  ;;  %vm268_vm3 = vcmp.eq.f32.partialorder %v973_v45, 0.0 }
  0xd0   :  { %v260_v51 = vsel %vm259_vm15, %v990_v0, %v258_v29  ;;  %v426_v15 = vadd.f32 %v425_v20, %v410_v2  ;;  %v411_v60 = vsel %vm1092_vm1, %v256_v34, 0.0  ;;  %v270_v35 = vsel %vm268_vm3, %v269_v19, %v267_v31 }
  0xd1   :  { %v263_v24 = vsel %vm261_vm14, %v262_v16, %v260_v51  ;;  %v274_v12 = vsel %vm273_vm4, %v1013_v21, %v272_v36  ;;  %v276_v0 = vand.u32 2147483648, %v1013_v21  ;;  %vm275_vm6 = vcmp.eq.f32.partialorder %v1013_v21, 0.0 }
  0xd2   :  { %v427_v17 = vadd.f32 %v426_v15, %v411_v60  ;;  %v412_v37 = vsel %vm395_vm2, %v263_v24, 0.0  ;;  %v413_v38 = vsel %vm396_vm11, %v270_v35, 0.0 }
  0xd3   :  { %v277_v26 = vsel %vm275_vm6, %v276_v0, %v274_v12 }
  0xd4   :  { %v428_v45 = vadd.f32 %v427_v17, %v412_v37  ;;  %v414_v42 = vsel %vm397_vm8, %v277_v26, 0.0 }
  0xd6   :  { %v429_v40 = vadd.f32 %v428_v45, %v413_v38 }
  0xd8   :  { %v430_v1 = vadd.f32 %v429_v40, %v414_v42 }
  0xda   :  { %v431_v41 = vrot.slane %v430_v1, 4 }
  0xdc   :  { %v432_v50 = vadd.f32 %v431_v41, %v430_v1 }
  0xde   :  { %v433_v43 = vrot.slane %v432_v50, 2 }
  0xe0   :  { %v434_v18 = vadd.f32 %v433_v43, %v432_v50 }
  0xe2   :  { %v435_v28 = vrot.slane %v434_v18, 1 }
  0xe4   :  { %v436_v21 = vadd.f32 %v435_v28, %v434_v18 }
  0xe6   :  { %437 = vst [vmem:[#allocation7] sm:$0x1] %v436_v21 }
  0xe7   :  { %549 = shalt.err (!%p546_p6)
}
  0xe8   :  { %s550_s12 = scalar_lea.hbm %s1135_s2, 16 }
  0xe9   :  { %p551_p7 = scmp.ne.s32.totalorder %s1135_s2, %s550_s12  ;;  %p554_p8 = scmp.lt.u32.totalorder %s550_s12, %s1135_s2 }
  0xeb   :  { %p556_p9 = pnand %p554_p8, %p551_p7 }
  0xed   :  { %559 = shalt.err (!%p556_p9)
}
  0xee   :  { %447 = dma.vmem_to_hbm [thread:$0]  %s445_s7, 16, %s1135_s2, [#allocation4]  }
  0xef   :  { %564 = dma.done.wait [#allocation4], 16  }
  0xf0   :  { %565 = vsyncadd [#allocation4], 4294967280 }
  0xf1   :  { %451 = vsyncpa [#allocation3], 1 }
  0xf2   :  { %452 = vsyncpa [#allocation6], 1 }
  0xf3   :  { %453 = vsyncpa [#allocation4], 1 }

</bundles_post_ra>
